<compile_context>
chip_gen: v7x
topology: tpu7x:2x2x1
jax: 0.10.0
libtpu: 0.0.40
codegen_flags: <defaults>
</compile_context>

<pallas_src>
import functools

import jax
import jax.numpy as jnp
from jax.experimental import pallas as pl
from jax.experimental.pallas import tpu as pltpu


def _hmax_kernel(x_ref, o_ref, *, group, width):
    """x_ref: (TILE_R, group*width) tile; o_ref: (TILE_R, group).

    Each block row packs `group` logical image rows of `width` pixels, so the
    load is lane-dense. Reduce every `width`-lane segment independently.
    """
    cols = []
    for j in range(group):  # static Python loop (group is small, e.g. 8)
        seg = x_ref[:, j * width:(j + 1) * width]           # (TILE_R, width)
        cols.append(jnp.max(seg, axis=-1, keepdims=True))   # (TILE_R, 1)
    out = cols[0] if group == 1 else jnp.concatenate(cols, axis=-1)
    o_ref[...] = out


def horizontal_max_pool2d(x: jax.Array) -> jax.Array:
    """Equivalent of nn.functional.max_pool2d(x, kernel_size=(1, W)).

    Args:
      x: (N, C, H, W) array.
    Returns:
      (N, C, H, 1) array of the same dtype.
    """
    N, C, H, W = x.shape
    R = N * C * H

    # Row packing: g rows per lane-row so loads use (close to) all 128 lanes.
    g = 1
    if W < 128:
        cand = max(1, 128 // W)
        if cand > 1 and R % cand == 0:
            g = cand

    Rg = R // g
    GW = g * W
    x2 = x.reshape(Rg, GW)  # free, contiguous reshape for NCHW layout

    # Row-block size: big enough to amortize the ~0.35us per-grid-step overhead,
    # capped at ~2 MiB so the double-buffered block fits scoped VMEM on all gens.
    itemsize = x.dtype.itemsize
    sublane = max(8, 32 // itemsize)           # 8 (f32), 16 (bf16), 32 (int8)
    target_block_bytes = 2 * 1024 * 1024
    row_bytes = max(1, GW * itemsize)
    tile_r = max(sublane, target_block_bytes // row_bytes)
    tile_r = min(tile_r, Rg)
    if Rg >= sublane:
        tile_r = max(sublane, (tile_r // sublane) * sublane)
    else:
        tile_r = Rg  # a block dim equal to the full (small) array dim is allowed
    # TODO(synk): for pathologically wide W, add a second "arbitrary" grid axis
    # over W with a -inf-initialized accumulator instead of holding full W per block.

    grid = (pl.cdiv(Rg, tile_r),)

    y2 = pl.pallas_call(
        functools.partial(_hmax_kernel, group=g, width=W),
        out_shape=jax.ShapeDtypeStruct((Rg, g), x.dtype),
        grid=grid,
        in_specs=[pl.BlockSpec((tile_r, GW), lambda i: (i, 0))],
        out_specs=pl.BlockSpec((tile_r, g), lambda i: (i, 0)),
        compiler_params=pltpu.CompilerParams(
            dimension_semantics=("parallel",),
        ),
    )(x2)

    return y2.reshape(N, C, H, 1)


if __name__ == "__main__":
    key = jax.random.PRNGKey(0)
    # Small NCHW example consistent with the module's forward.
    N, C, H, W = 2, 4, 16, 16
    x = jax.random.normal(key, (N, C, H, W), dtype=jnp.float32)

    y = horizontal_max_pool2d(x)
    y = jax.block_until_ready(y)

    # Reference check against plain JAX reduction.
    y_ref = jnp.max(x, axis=-1, keepdims=True)
    assert y.shape == (N, C, H, 1), y.shape
    assert y.dtype == x.dtype, y.dtype
    assert jnp.allclose(y, y_ref), "mismatch vs reference"

    print("KERNEL_OK")
</pallas_src>

<mosaic_0001>
module attributes {stable_mosaic.version = 11 : i64} {
  func.func @_hmax_kernel(%arg0: i32, %arg1: memref<16x128xf32, #tpu.memory_space<vmem>>, %arg2: memref<16x8xf32, #tpu.memory_space<vmem>>) attributes {dimension_semantics = [#tpu.dimension_semantics<parallel>], iteration_bounds = array<i64: 1>, scalar_prefetch = 0 : i64, scratch_operands = 0 : i64, tpu.core_type = #tpu.core_type<tc>, window_params = [{transform_indices = @transform_0, window_bounds = array<i64: 16, 128>}, {transform_indices = @transform_1, window_bounds = array<i64: 16, 8>}]} {
    %c0 = arith.constant 0 : index
    %c0_0 = arith.constant 0 : index
    %0 = vector.load %arg1[%c0, %c0_0] : memref<16x128xf32, #tpu.memory_space<vmem>>, vector<16x16xf32>
    %cst = arith.constant dense<0xFF800000> : vector<16xf32>
    %1 = vector.multi_reduction <maximumf>, %0, %cst [1] : vector<16x16xf32> to vector<16xf32>
    %2 = vector.shape_cast %1 : vector<16xf32> to vector<16x1xf32>
    %c0_1 = arith.constant 0 : index
    %c16 = arith.constant 16 : index
    %3 = vector.load %arg1[%c0_1, %c16] : memref<16x128xf32, #tpu.memory_space<vmem>>, vector<16x16xf32>
    %cst_2 = arith.constant dense<0xFF800000> : vector<16xf32>
    %4 = vector.multi_reduction <maximumf>, %3, %cst_2 [1] : vector<16x16xf32> to vector<16xf32>
    %5 = vector.shape_cast %4 : vector<16xf32> to vector<16x1xf32>
    %c0_3 = arith.constant 0 : index
    %c32 = arith.constant 32 : index
    %6 = vector.load %arg1[%c0_3, %c32] : memref<16x128xf32, #tpu.memory_space<vmem>>, vector<16x16xf32>
    %cst_4 = arith.constant dense<0xFF800000> : vector<16xf32>
    %7 = vector.multi_reduction <maximumf>, %6, %cst_4 [1] : vector<16x16xf32> to vector<16xf32>
    %8 = vector.shape_cast %7 : vector<16xf32> to vector<16x1xf32>
    %c0_5 = arith.constant 0 : index
    %c48 = arith.constant 48 : index
    %9 = vector.load %arg1[%c0_5, %c48] : memref<16x128xf32, #tpu.memory_space<vmem>>, vector<16x16xf32>
    %cst_6 = arith.constant dense<0xFF800000> : vector<16xf32>
    %10 = vector.multi_reduction <maximumf>, %9, %cst_6 [1] : vector<16x16xf32> to vector<16xf32>
    %11 = vector.shape_cast %10 : vector<16xf32> to vector<16x1xf32>
    %c0_7 = arith.constant 0 : index
    %c64 = arith.constant 64 : index
    %12 = vector.load %arg1[%c0_7, %c64] : memref<16x128xf32, #tpu.memory_space<vmem>>, vector<16x16xf32>
    %cst_8 = arith.constant dense<0xFF800000> : vector<16xf32>
    %13 = vector.multi_reduction <maximumf>, %12, %cst_8 [1] : vector<16x16xf32> to vector<16xf32>
    %14 = vector.shape_cast %13 : vector<16xf32> to vector<16x1xf32>
    %c0_9 = arith.constant 0 : index
    %c80 = arith.constant 80 : index
    %15 = vector.load %arg1[%c0_9, %c80] : memref<16x128xf32, #tpu.memory_space<vmem>>, vector<16x16xf32>
    %cst_10 = arith.constant dense<0xFF800000> : vector<16xf32>
    %16 = vector.multi_reduction <maximumf>, %15, %cst_10 [1] : vector<16x16xf32> to vector<16xf32>
    %17 = vector.shape_cast %16 : vector<16xf32> to vector<16x1xf32>
    %c0_11 = arith.constant 0 : index
    %c96 = arith.constant 96 : index
    %18 = vector.load %arg1[%c0_11, %c96] : memref<16x128xf32, #tpu.memory_space<vmem>>, vector<16x16xf32>
    %cst_12 = arith.constant dense<0xFF800000> : vector<16xf32>
    %19 = vector.multi_reduction <maximumf>, %18, %cst_12 [1] : vector<16x16xf32> to vector<16xf32>
    %20 = vector.shape_cast %19 : vector<16xf32> to vector<16x1xf32>
    %c0_13 = arith.constant 0 : index
    %c112 = arith.constant 112 : index
    %21 = vector.load %arg1[%c0_13, %c112] : memref<16x128xf32, #tpu.memory_space<vmem>>, vector<16x16xf32>
    %cst_14 = arith.constant dense<0xFF800000> : vector<16xf32>
    %22 = vector.multi_reduction <maximumf>, %21, %cst_14 [1] : vector<16x16xf32> to vector<16xf32>
    %23 = vector.shape_cast %22 : vector<16xf32> to vector<16x1xf32>
    %24 = tpu.concatenate %2, %5, %8, %11, %14, %17, %20, %23 in 1 : vector<16x1xf32>, vector<16x1xf32>, vector<16x1xf32>, vector<16x1xf32>, vector<16x1xf32>, vector<16x1xf32>, vector<16x1xf32>, vector<16x1xf32> -> vector<16x8xf32>
    %c0_15 = arith.constant 0 : index
    %c0_16 = arith.constant 0 : index
    %25 = vector.load %arg2[%c0_15, %c0_16] : memref<16x8xf32, #tpu.memory_space<vmem>>, vector<16x8xf32>
    tpu.vector_store %arg2[%c0_15, %c0_16], %24 {strides = array<i32>} : memref<16x8xf32, #tpu.memory_space<vmem>>, vector<16x8xf32>,
    return
  }
  func.func @transform_0(%arg0: i32) -> (i32, i32) {
    %c0_i32 = arith.constant 0 : i32
    %c0_i32_0 = arith.constant 0 : i32
    return %arg0, %c0_i32 : i32, i32
  }
  func.func @transform_1(%arg0: i32) -> (i32, i32) {
    %c0_i32 = arith.constant 0 : i32
    %c0_i32_0 = arith.constant 0 : i32
    return %arg0, %c0_i32 : i32, i32
  }
}

</mosaic_0001>

<bundles_post_ra>
// kernel: tpu_custom_call.1
= control target key start
LH: loop header
LB: loop body
LE: loop exit
PB: predicated region body
PF: predicated region fallthrough
CT: control target
= control target key end

     0   :  { %6 = vsyncpa [#allocation3], 0  ;;  %s136_s6 = smov [#allocation2]   ;;  %s167_s0 = inlined_call_operand.hbm [shape: f32[16,128], index: 0, kind: input, shape index: {}]   ;;  %s168_s1 = inlined_call_operand.vmem [shape: f32[16,8], index: 1, kind: output, shape index: {}]  }
   0x1   :  { %s12_s7 = sshll.u32 %s136_s6, 4  ;;  %s112_s10 = scalar_lea.hbm %s167_s0, 256  ;;  %s13_s7 = int_to_ptr.vmem [resolvable:$true] %s12_s7 }
   0x2   :  { %p113_p0 = scmp.ne.s32.totalorder %s167_s0, %s112_s10  ;;  %p116_p1 = scmp.lt.u32.totalorder %s112_s10, %s167_s0 }
   0x4   :  { %p118_p2 = pnand %p116_p1, %p113_p0 }
   0x6   :  { %121 = shalt.err (!%p118_p2)
}
   0x7   :  { %s122_s15 = scalar_lea.vmem %s13_s7, 256  ;;  %p127_p4 = scmp.lt.s32.totalorder %s13_s7, %s13_s7 }
   0x8   :  { %p123_p3 = scmp.ne.s32.totalorder %s13_s7, %s122_s15  ;;  %p128_p5 = scmp.lt.s32.totalorder %s122_s15, %s122_s15 }
   0xa   :  { %p129_p6 = por %p128_p5, %p127_p4 }
   0xc   :  { %p130_p7 = pnand %p129_p6, %p123_p3 }
   0xe   :  { %133 = shalt.err (!%p130_p7)
}
   0xf   :  { %s137_s16 = smov 128   ;;  %s138_s17 = smov 8  }
  0x10   :  { %18 = dma.hbm_to_vmem [thread:$0]  %s167_s0, 256, %s13_s7, [#allocation3], %s137_s16, %s137_s16, %s138_s17  }
  0x11   :  { %134 = dma.done.wait [#allocation3], 256  }
  0x12   :  { %135 = vsyncadd [#allocation3], 4294967040  ;;  %vm31_vm0 = vcmask 261248   ;;  %vm24_vm1 = vcmask 130048   ;;  %v22_v0 = vld [vmem:[#allocation2] sm:$0xff]  ;;  %v23_v1 = vld [vmem:[#allocation2 + $0x8] sm:$0xff] }
  0x13   :  { %v32_v2 = vsel %vm31_vm0, %v22_v0, -inf  ;;  %v25_v3 = vsel %vm24_vm1, %v22_v0, -inf  ;;  %v35_v4 = vsel %vm31_vm0, %v23_v1, -inf  ;;  %v28_v5 = vsel %vm24_vm1, %v23_v1, -inf }
  0x14   :  { %33 = vmax.xlane.f32.xlu1 %v32_v2  ;;  %26 = vmax.xlane.f32.xlu0 %v25_v3  ;;  %vm38_vm2 = vcmask 392448   ;;  %vm45_vm3 = vcmask 523648   ;;  %vm52_vm4 = vcmask 654848   ;;  %vm59_vm5 = vcmask 786048  }
  0x15   :  { %v42_v6 = vsel %vm38_vm2, %v23_v1, -inf  ;;  %v39_v7 = vsel %vm38_vm2, %v22_v0, -inf  ;;  %v49_v8 = vsel %vm45_vm3, %v23_v1, -inf  ;;  %v46_v9 = vsel %vm45_vm3, %v22_v0, -inf }
  0x16   :  { %v56_v10 = vsel %vm52_vm4, %v23_v1, -inf  ;;  %v53_v11 = vsel %vm52_vm4, %v22_v0, -inf  ;;  %v63_v12 = vsel %vm59_vm5, %v23_v1, -inf  ;;  %v60_v13 = vsel %vm59_vm5, %v22_v0, -inf }
  0x17   :  { %vm66_vm6 = vcmask 917248   ;;  %vm73_vm7 = vcmask 1048448   ;;  %vm80_vm8 = vcmask 7168   ;;  %vm83_vm9 = vcmask 15360  }
  0x18   :  { %36 = vmax.xlane.f32.xlu1 %v35_v4  ;;  %29 = vmax.xlane.f32.xlu0 %v28_v5  ;;  %v70_v14 = vsel %vm66_vm6, %v23_v1, -inf  ;;  %v67_v15 = vsel %vm66_vm6, %v22_v0, -inf  ;;  %v77_v16 = vsel %vm73_vm7, %v23_v1, -inf  ;;  %v74_v17 = vsel %vm73_vm7, %v22_v0, -inf }
  0x19   :  { %vm86_vm10 = vcmask 23552   ;;  %vm89_vm11 = vcmask 31744   ;;  %vm92_vm12 = vcmask 39936   ;;  %vm95_vm13 = vcmask 48128  }
  0x1a   :  { %vm98_vm14 = vcmask 56320   ;;  %vm101_vm15 = vcmask 64512  }
  0x1c   :  { %43 = vmax.xlane.f32.xlu1 %v42_v6  ;;  %40 = vmax.xlane.f32.xlu0 %v39_v7 }
  0x20   :  { %50 = vmax.xlane.f32.xlu1 %v49_v8  ;;  %47 = vmax.xlane.f32.xlu0 %v46_v9 }
  0x24   :  { %57 = vmax.xlane.f32.xlu1 %v56_v10  ;;  %54 = vmax.xlane.f32.xlu0 %v53_v11 }
  0x28   :  { %64 = vmax.xlane.f32.xlu1 %v63_v12  ;;  %61 = vmax.xlane.f32.xlu0 %v60_v13 }
  0x2c   :  { %71 = vmax.xlane.f32.xlu1 %v70_v14  ;;  %68 = vmax.xlane.f32.xlu0 %v67_v15 }
  0x30   :  { %78 = vmax.xlane.f32.xlu1 %v77_v16  ;;  %75 = vmax.xlane.f32.xlu0 %v74_v17 }
  0xa1   :  { %v34_v18 = vpop.xlane.xlu1 %33  ;;  %v27_v19 = vpop.xlane.xlu0 %26 }
  0xa2   :  { %v81_v30 = vsel %vm80_vm8, %v27_v19, %v34_v18 }
  0xa5   :  { %v37_v20 = vpop.xlane.xlu1 %36  ;;  %v30_v21 = vpop.xlane.xlu0 %29 }
  0xa6   :  { %v82_v31 = vsel %vm80_vm8, %v30_v21, %v37_v20 }
  0xa9   :  { %v44_v22 = vpop.xlane.xlu1 %43  ;;  %v41_v23 = vpop.xlane.xlu0 %40 }
  0xaa   :  { %v85_v32 = vsel %vm83_vm9, %v82_v31, %v44_v22  ;;  %v84_v33 = vsel %vm83_vm9, %v81_v30, %v41_v23 }
  0xad   :  { %v51_v24 = vpop.xlane.xlu1 %50  ;;  %v48_v25 = vpop.xlane.xlu0 %47 }
  0xae   :  { %v88_v36 = vsel %vm86_vm10, %v85_v32, %v51_v24  ;;  %v87_v37 = vsel %vm86_vm10, %v84_v33, %v48_v25 }
  0xb1   :  { %v58_v26 = vpop.xlane.xlu1 %57  ;;  %v55_v27 = vpop.xlane.xlu0 %54 }
  0xb2   :  { %v91_v38 = vsel %vm89_vm11, %v88_v36, %v58_v26  ;;  %v90_v39 = vsel %vm89_vm11, %v87_v37, %v55_v27 }
  0xb5   :  { %v65_v28 = vpop.xlane.xlu1 %64  ;;  %v62_v29 = vpop.xlane.xlu0 %61 }
  0xb6   :  { %v94_v40 = vsel %vm92_vm12, %v91_v38, %v65_v28  ;;  %v93_v41 = vsel %vm92_vm12, %v90_v39, %v62_v29 }
  0xb9   :  { %v72_v34 = vpop.xlane.xlu1 %71  ;;  %v69_v35 = vpop.xlane.xlu0 %68 }
  0xba   :  { %v97_v42 = vsel %vm95_vm13, %v94_v40, %v72_v34  ;;  %v96_v43 = vsel %vm95_vm13, %v93_v41, %v69_v35 }
  0xbd   :  { %v79_v44 = vpop.xlane.xlu1 %78  ;;  %v76_v45 = vpop.xlane.xlu0 %75 }
  0xbe   :  { %v100_v46 = vsel %vm98_vm14, %v97_v42, %v79_v44  ;;  %v99_v47 = vsel %vm98_vm14, %v96_v43, %v76_v45 }
  0xbf   :  { %103 = vst.msk [vmem:[%s168_s1 + $0x8] sm:$0xff] %vm101_vm15, %v100_v46  ;;  %102 = vst.msk [vmem:[%s168_s1] sm:$0xff] %vm101_vm15, %v99_v47 }
  0xc0   :  { %108 = vsyncpa [#allocation3], 1 }

</bundles_post_ra>
